<compile_context>
chip_gen: v7x
topology: tpu7x:2x2x1
jax: 0.10.0
libtpu: 0.0.40
codegen_flags: <defaults>
</compile_context>

<pallas_src>
import functools

import jax
import jax.numpy as jnp
from jax.experimental import pallas as pl
from jax.experimental.pallas import tpu as pltpu


def _round_up(x: int, m: int) -> int:
    return (x + m - 1) // m * m


def _lr_kernel(x_ref, w_ref, b_ref, gamma_ref, beta_ref, bits_ref, o_ref,
               *, drop_p: float, eps: float):
    # ----- Linear (MXU): bf16 inputs, f32 accumulation.  z = x @ W -----
    z = jnp.dot(x_ref[...], w_ref[...], preferred_element_type=jnp.float32)

    # ----- BatchNorm1d, training mode (batch mean, biased variance) -----
    inv_b = 1.0 / z.shape[0]
    mean = jnp.sum(z, axis=0, keepdims=True) * inv_b            # E[xW]
    mean_sq = jnp.sum(z * z, axis=0, keepdims=True) * inv_b     # E[(xW)^2]
    var = mean_sq - mean * mean                                 # biased var (bias-invariant)

    a = gamma_ref[...] * jax.lax.rsqrt(var + eps)               # per-column scale
    mean_zb = mean + b_ref[...]                                 # E[xW + b]
    # shift folds the linear bias and BN beta; algebraically == beta - mean*a
    # because (z + b) - (mean(z) + b) == z - mean(z).
    shift = beta_ref[...] - mean_zb * a + b_ref[...] * a

    # ----- Dropout(p): fold 1/(1-p) into the per-column scale/shift -----
    inv_keep = 1.0 / (1.0 - drop_p)
    a = a * inv_keep
    shift = shift * inv_keep
    thresh = jnp.uint32(int(drop_p * float(1 << 32)))           # keep-prob = 1-p
    keep = bits_ref[...] >= thresh

    # Per-element epilogue: mul + add + select + max.
    y = jnp.where(keep, z * a + shift, 0.0)

    # ----- ReLU -----
    o_ref[...] = jnp.maximum(y, 0.0)


def logistic_regression_forward(x, w, b, gamma, beta, dropout_key,
                                *, drop_p=0.2, eps=1e-5):
    """x: (B, F_in) f32; w: (F_in, F_out); b/gamma/beta: (F_out,); dropout_key: PRNGKey."""
    B, F_in = x.shape
    F_out = w.shape[1]

    # Lane-dense tiling over the output-feature axis (multiple of 128 lanes).
    tn = 512 if F_out >= 512 else _round_up(F_out, 128)
    f_pad = _round_up(F_out, tn)
    n_tiles = f_pad // tn
    pad = f_pad - F_out

    # Pad params along F_out: padded columns produce exactly 0 at the output
    # (W=0, b=0, gamma=1, beta=0) and are sliced off afterwards.
    x_bf = x.astype(jnp.bfloat16)
    w_p = jnp.pad(w, ((0, 0), (0, pad))).astype(jnp.bfloat16)
    b_p = jnp.pad(b.reshape(1, F_out).astype(jnp.float32), ((0, 0), (0, pad)))
    g_p = jnp.pad(gamma.reshape(1, F_out).astype(jnp.float32), ((0, 0), (0, pad)),
                  constant_values=1.0)
    be_p = jnp.pad(beta.reshape(1, F_out).astype(jnp.float32), ((0, 0), (0, pad)))

    # Dropout random bits from the portable JAX PRNG (works compiled and in
    # interpret mode; pltpu.prng_* only lowers for the TPU backend).
    bits = jax.random.bits(dropout_key, (B, f_pad), dtype=jnp.uint32)

    kernel = functools.partial(_lr_kernel, drop_p=float(drop_p), eps=float(eps))

    out = pl.pallas_call(
        kernel,
        out_shape=jax.ShapeDtypeStruct((B, f_pad), jnp.float32),
        grid=(n_tiles,),
        in_specs=[
            pl.BlockSpec((B, F_in), lambda j: (0, 0)),    # x (resident across tiles)
            pl.BlockSpec((F_in, tn), lambda j: (0, j)),   # W tile (full K per tile)
            pl.BlockSpec((1, tn), lambda j: (0, j)),      # bias
            pl.BlockSpec((1, tn), lambda j: (0, j)),      # gamma
            pl.BlockSpec((1, tn), lambda j: (0, j)),      # beta
            pl.BlockSpec((B, tn), lambda j: (0, j)),      # dropout bits
        ],
        out_specs=pl.BlockSpec((B, tn), lambda j: (0, j)),
        compiler_params=pltpu.CompilerParams(
            dimension_semantics=("parallel",)),
    )(x_bf, w_p, b_p, g_p, be_p, bits)

    return out[:, :F_out]


if __name__ == "__main__":
    # Small shapes consistent with the module.  BatchNorm1d(input_size) applied
    # to the linear output forces input_size == output_size.
    B, F_in, F_out = 8, 32, 32

    key = jax.random.PRNGKey(0)
    kx, kw, kb, kg, kbe, kdrop = jax.random.split(key, 6)

    x = jax.random.normal(kx, (B, F_in), dtype=jnp.float32)
    # PyTorch-like uniform(-1/sqrt(fan_in), +1/sqrt(fan_in)) init.
    bound = 1.0 / (F_in ** 0.5)
    w = jax.random.uniform(kw, (F_in, F_out), jnp.float32, -bound, bound)
    b = jax.random.uniform(kb, (F_out,), jnp.float32, -bound, bound)
    gamma = jnp.ones((F_out,), jnp.float32) + 0.05 * jax.random.normal(kg, (F_out,))
    beta = 0.05 * jax.random.normal(kbe, (F_out,), dtype=jnp.float32)

    out = logistic_regression_forward(x, w, b, gamma, beta, kdrop)
    jax.block_until_ready(out)

    assert out.shape == (B, F_out) and out.dtype == jnp.float32
    assert bool(jnp.all(out >= 0.0)) and bool(jnp.all(jnp.isfinite(out)))
    print("KERNEL_OK")
</pallas_src>

<mosaic_0001>
module attributes {stable_mosaic.version = 11 : i64} {
  func.func @_lr_kernel(%arg0: i32, %arg1: memref<8x32xbf16, #tpu.memory_space<vmem>>, %arg2: memref<32x128xbf16, #tpu.memory_space<vmem>>, %arg3: memref<1x128xf32, #tpu.memory_space<vmem>>, %arg4: memref<1x128xf32, #tpu.memory_space<vmem>>, %arg5: memref<1x128xf32, #tpu.memory_space<vmem>>, %arg6: memref<8x128xi32, #tpu.memory_space<vmem>>, %arg7: memref<8x128xf32, #tpu.memory_space<vmem>>) attributes {dimension_semantics = [#tpu.dimension_semantics<parallel>], iteration_bounds = array<i64: 1>, scalar_prefetch = 0 : i64, scratch_operands = 0 : i64, tpu.core_type = #tpu.core_type<tc>, window_params = [{pipeline_mode = #tpu.pipeline_mode<synchronous>, transform_indices = @transform_0, window_bounds = array<i64: 8, 32>}, {transform_indices = @transform_1, window_bounds = array<i64: 32, 128>}, {transform_indices = @transform_2, window_bounds = array<i64: 1, 128>}, {transform_indices = @transform_3, window_bounds = array<i64: 1, 128>}, {transform_indices = @transform_4, window_bounds = array<i64: 1, 128>}, {transform_indices = @transform_5, window_bounds = array<i64: 8, 128>}, {transform_indices = @transform_6, window_bounds = array<i64: 8, 128>}]} {
    %c0 = arith.constant 0 : index
    %c0_0 = arith.constant 0 : index
    %0 = vector.load %arg1[%c0, %c0_0] : memref<8x32xbf16, #tpu.memory_space<vmem>>, vector<8x32xbf16>
    %c0_1 = arith.constant 0 : index
    %c0_2 = arith.constant 0 : index
    %1 = vector.load %arg2[%c0_1, %c0_2] : memref<32x128xbf16, #tpu.memory_space<vmem>>, vector<32x128xbf16>
    %cst = arith.constant dense<0.000000e+00> : vector<8x128xf32>
    %2 = tpu.matmul %0, %1, %cst {dimension_numbers = #tpu.dot_dimension_numbers<[1], [0], [0], [1], [0, 0, 1, 1], [], []>} : vector<8x32xbf16>, vector<32x128xbf16>, vector<8x128xf32> -> vector<8x128xf32>
    %cst_3 = arith.constant dense<0.000000e+00> : vector<128xf32>
    %3 = vector.multi_reduction <add>, %2, %cst_3 [0] : vector<8x128xf32> to vector<128xf32>
    %4 = vector.shape_cast %3 : vector<128xf32> to vector<1x128xf32>
    %cst_4 = arith.constant 1.250000e-01 : f32
    %5 = vector.broadcast %cst_4 : f32 to vector<1x128xf32>
    %6 = arith.mulf %4, %5 : vector<1x128xf32>
    %7 = arith.mulf %2, %2 : vector<8x128xf32>
    %cst_5 = arith.constant dense<0.000000e+00> : vector<128xf32>
    %8 = vector.multi_reduction <add>, %7, %cst_5 [0] : vector<8x128xf32> to vector<128xf32>
    %9 = vector.shape_cast %8 : vector<128xf32> to vector<1x128xf32>
    %cst_6 = arith.constant 1.250000e-01 : f32
    %10 = vector.broadcast %cst_6 : f32 to vector<1x128xf32>
    %11 = arith.mulf %9, %10 : vector<1x128xf32>
    %12 = arith.mulf %6, %6 : vector<1x128xf32>
    %13 = arith.subf %11, %12 : vector<1x128xf32>
    %c0_7 = arith.constant 0 : index
    %c0_8 = arith.constant 0 : index
    %14 = vector.load %arg4[%c0_7, %c0_8] : memref<1x128xf32, #tpu.memory_space<vmem>>, vector<1x128xf32>
    %cst_9 = arith.constant 9.99999974E-6 : f32
    %15 = vector.broadcast %cst_9 : f32 to vector<1x128xf32>
    %16 = arith.addf %13, %15 : vector<1x128xf32>
    %17 = math.rsqrt %16 : vector<1x128xf32>
    %18 = arith.mulf %14, %17 : vector<1x128xf32>
    %c0_10 = arith.constant 0 : index
    %c0_11 = arith.constant 0 : index
    %19 = vector.load %arg3[%c0_10, %c0_11] : memref<1x128xf32, #tpu.memory_space<vmem>>, vector<1x128xf32>
    %20 = arith.addf %6, %19 : vector<1x128xf32>
    %c0_12 = arith.constant 0 : index
    %c0_13 = arith.constant 0 : index
    %21 = vector.load %arg5[%c0_12, %c0_13] : memref<1x128xf32, #tpu.memory_space<vmem>>, vector<1x128xf32>
    %22 = arith.mulf %20, %18 : vector<1x128xf32>
    %23 = arith.subf %21, %22 : vector<1x128xf32>
    %c0_14 = arith.constant 0 : index
    %c0_15 = arith.constant 0 : index
    %24 = vector.load %arg3[%c0_14, %c0_15] : memref<1x128xf32, #tpu.memory_space<vmem>>, vector<1x128xf32>
    %25 = arith.mulf %24, %18 : vector<1x128xf32>
    %26 = arith.addf %23, %25 : vector<1x128xf32>
    %cst_16 = arith.constant 1.250000e+00 : f32
    %27 = vector.broadcast %cst_16 : f32 to vector<1x128xf32>
    %28 = arith.mulf %18, %27 : vector<1x128xf32>
    %cst_17 = arith.constant 1.250000e+00 : f32
    %29 = vector.broadcast %cst_17 : f32 to vector<1x128xf32>
    %30 = arith.mulf %26, %29 : vector<1x128xf32>
    %c0_18 = arith.constant 0 : index
    %c0_19 = arith.constant 0 : index
    %31 = vector.load %arg6[%c0_18, %c0_19] : memref<8x128xi32, #tpu.memory_space<vmem>>, vector<8x128xi32>
    %c858993459_i32 = arith.constant 858993459 : i32
    %32 = vector.broadcast %c858993459_i32 : i32 to vector<8x128xi32>
    %33 = arith.cmpi uge, %31, %32 : vector<8x128xi32>
    %34 = vector.broadcast %28 : vector<1x128xf32> to vector<8x128xf32>
    %35 = arith.mulf %2, %34 : vector<8x128xf32>
    %36 = vector.broadcast %30 : vector<1x128xf32> to vector<8x128xf32>
    %37 = arith.addf %35, %36 : vector<8x128xf32>
    %cst_20 = arith.constant 0.000000e+00 : f32
    %38 = vector.broadcast %cst_20 : f32 to vector<8x128xf32>
    %39 = arith.select %33, %37, %38 : vector<8x128xi1>, vector<8x128xf32>
    %cst_21 = arith.constant 0.000000e+00 : f32
    %40 = vector.broadcast %cst_21 : f32 to vector<8x128xf32>
    %41 = arith.maximumf %39, %40 : vector<8x128xf32>
    %c0_22 = arith.constant 0 : index
    %c0_23 = arith.constant 0 : index
    %42 = vector.load %arg7[%c0_22, %c0_23] : memref<8x128xf32, #tpu.memory_space<vmem>>, vector<8x128xf32>
    tpu.vector_store %arg7[%c0_22, %c0_23], %41 {strides = array<i32>} : memref<8x128xf32, #tpu.memory_space<vmem>>, vector<8x128xf32>,
    return
  }
  func.func @transform_0(%arg0: i32) -> (i32, i32) {
    %c0_i32 = arith.constant 0 : i32
    %c0_i32_0 = arith.constant 0 : i32
    %c0_i32_1 = arith.constant 0 : i32
    return %c0_i32, %c0_i32_0 : i32, i32
  }
  func.func @transform_1(%arg0: i32) -> (i32, i32) {
    %c0_i32 = arith.constant 0 : i32
    %c0_i32_0 = arith.constant 0 : i32
    return %c0_i32, %arg0 : i32, i32
  }
  func.func @transform_2(%arg0: i32) -> (i32, i32) {
    %c0_i32 = arith.constant 0 : i32
    %c0_i32_0 = arith.constant 0 : i32
    return %c0_i32, %arg0 : i32, i32
  }
  func.func @transform_3(%arg0: i32) -> (i32, i32) {
    %c0_i32 = arith.constant 0 : i32
    %c0_i32_0 = arith.constant 0 : i32
    return %c0_i32, %arg0 : i32, i32
  }
  func.func @transform_4(%arg0: i32) -> (i32, i32) {
    %c0_i32 = arith.constant 0 : i32
    %c0_i32_0 = arith.constant 0 : i32
    return %c0_i32, %arg0 : i32, i32
  }
  func.func @transform_5(%arg0: i32) -> (i32, i32) {
    %c0_i32 = arith.constant 0 : i32
    %c0_i32_0 = arith.constant 0 : i32
    return %c0_i32, %arg0 : i32, i32
  }
  func.func @transform_6(%arg0: i32) -> (i32, i32) {
    %c0_i32 = arith.constant 0 : i32
    %c0_i32_0 = arith.constant 0 : i32
    return %c0_i32, %arg0 : i32, i32
  }
}

</mosaic_0001>

<bundles_post_ra>
// kernel: tpu_custom_call.1
= control target key start
LH: loop header
LB: loop body
LE: loop exit
PB: predicated region body
PF: predicated region fallthrough
CT: control target
= control target key end

     0   :  { %11 = vsyncpa [#allocation3], 0  ;;  %s371_s0 = inlined_call_operand.hbm [shape: bf16[8,32], index: 0, kind: input, shape index: {}]   ;;  %s372_s1 = inlined_call_operand.hbm [shape: bf16[32,128], index: 1, kind: input, shape index: {}]   ;;  %s373_s2 = inlined_call_operand.vmem [shape: f32[1,128], index: 2, kind: input, shape index: {}]   ;;  %s374_s3 = inlined_call_operand.vmem [shape: f32[1,128], index: 3, kind: input, shape index: {}]   ;;  %s375_s4 = inlined_call_operand.vmem [shape: f32[1,128], index: 4, kind: input, shape index: {}]   ;;  %s376_s5 = inlined_call_operand.vmem [shape: u32[8,128], index: 5, kind: input, shape index: {}]   ;;  %s377_s6 = inlined_call_operand.hbm [shape: f32[8,128], index: 6, kind: output, shape index: {}]  }
   0x1   :  { %12 = vsyncpa [#allocation6], 0 }
   0x2   :  { %13 = vsyncpa [#allocation4], 0  ;;  %s274_s21 = smov [#allocation2]   ;;  %s275_s23 = smov [#allocation5]  }
   0x3   :  { %s20_s22 = sshll.u32 %s274_s21, 4  ;;  %s29_s24 = sshll.u32 %s275_s23, 4  ;;  %s21_s22 = int_to_ptr.vmem [resolvable:$true] %s20_s22  ;;  %s316_s24 = int_to_ptr.vmem [resolvable:$true] %s29_s24 }
   0x4   :  { %s202_s27 = scalar_lea.hbm %s371_s0, 64 }
   0x5   :  { %p203_p0 = scmp.ne.s32.totalorder %s371_s0, %s202_s27  ;;  %p206_p1 = scmp.lt.u32.totalorder %s202_s27, %s371_s0 }
   0x7   :  { %p208_p2 = pnand %p206_p1, %p203_p0 }
   0x9   :  { %211 = shalt.err (!%p208_p2)
}
   0xa   :  { %s212_s8 = scalar_lea.vmem %s21_s22, 64  ;;  %p217_p4 = scmp.lt.s32.totalorder %s21_s22, %s21_s22 }
   0xb   :  { %p213_p3 = scmp.ne.s32.totalorder %s21_s22, %s212_s8  ;;  %p218_p5 = scmp.lt.s32.totalorder %s212_s8, %s212_s8 }
   0xd   :  { %p219_p6 = por %p218_p5, %p217_p4 }
   0xf   :  { %p220_p7 = pnand %p219_p6, %p213_p3 }
  0x11   :  { %223 = shalt.err (!%p220_p7)
}
  0x12   :  { %23 = dma.hbm_to_vmem [thread:$0]  %s371_s0, 64, %s21_s22, [#allocation3]  }
  0x13   :  { %s224_s13 = scalar_lea.hbm %s372_s1, 256 }
  0x14   :  { %p225_p8 = scmp.ne.s32.totalorder %s372_s1, %s224_s13  ;;  %p228_p9 = scmp.lt.u32.totalorder %s224_s13, %s372_s1 }
  0x16   :  { %p230_p10 = pnand %p228_p9, %p225_p8 }
  0x18   :  { %233 = shalt.err (!%p230_p10)
}
  0x19   :  { %s234_s18 = scalar_lea.vmem %s316_s24, 256  ;;  %p239_p12 = scmp.lt.s32.totalorder %s316_s24, %s316_s24 }
  0x1a   :  { %p235_p11 = scmp.ne.s32.totalorder %s316_s24, %s234_s18  ;;  %p240_p13 = scmp.lt.s32.totalorder %s234_s18, %s234_s18 }
  0x1c   :  { %p241_p0 = por %p240_p13, %p239_p12 }
  0x1e   :  { %p242_p1 = pnand %p241_p0, %p235_p11 }
  0x20   :  { %245 = shalt.err (!%p242_p1)
}
  0x21   :  { %s276_s0 = smov 64   ;;  %s277_s19 = smov 4  }
  0x22   :  { %35 = dma.hbm_to_vmem [thread:$0]  %s372_s1, 256, %s316_s24, [#allocation6], %s276_s0, %s276_s0, %s277_s19  }
  0x23   :  { %268 = dma.done.wait [#allocation3], 64  }
  0x24   :  { %269 = vsyncadd [#allocation3], 4294967232 }
  0x25   :  { %270 = dma.done.wait [#allocation6], 256  }
  0x26   :  { %271 = vsyncadd [#allocation6], 4294967040  ;;  %v278_v0 = vmov 0.0   ;;  %vm279_vm0 = vmmov 0   ;;  %v198_v1 = vld [vmem:[#allocation5] sm:$0xff]   ;;  %v199_v2 = vld [vmem:[#allocation5 + $0x8] sm:$0xff]   ;;  %v145_v26 = vlaneseq }
  0x27   :  { %183 = vmatprep.subr.bf16.mxu0 %v278_v0  ;;  %187 = vmatprep.mubr.msk.bf16.mxu0 %vm279_vm0, %v278_v0  ;;  %v51_v3 = vld [vmem:[#allocation2] sm:$0xf]  ;;  %vm68_vm1 = vcmask 261120   ;;  %v129_v27 = vld [vmem:[%s374_s3] sm:$0x1] }
  0x28   :  { %184 = vmatpush3.bf16.msra.mxu0 %v198_v1  ;;  %v133_v28 = vld [vmem:[%s373_s2] sm:$0x1]  ;;  %v146_v29 = vshrl.u32 %v145_v26, 7  ;;  %s280_s2 = smov [#allocation7]  }
  0x29   :  { %185 = vmatprep.subr.bf16.mxu0 %v278_v0  ;;  %v135_v33 = vld [vmem:[%s375_s4] sm:$0x1]  ;;  %s167_s28 = sshll.u32 %s280_s2, 4  ;;  %s168_s28 = int_to_ptr.vmem [resolvable:$true] %s167_s28 }
  0x2a   :  { %v147_v36 = vsub.s32 0, %v146_v29  ;;  %v142_v42 = vld [vmem:[%s376_s5] sm:$0xff]  ;;  %s246_s4 = scalar_lea.vmem %s168_s28, 128  ;;  %p251_p3 = scmp.lt.s32.totalorder %s168_s28, %s168_s28 }
  0x2b   :  { %vm143_vm2 = vcmp.ge.u32.totalorder %v142_v42, 858993459  ;;  %p247_p2 = scmp.ne.s32.totalorder %s168_s28, %s246_s4  ;;  %p252_p4 = scmp.lt.s32.totalorder %s246_s4, %s246_s4 }
  0x2c   :  { %186 = vmatpush3.bf16.msra.mxu0 %v199_v2 }
  0x2d   :  { %p253_p5 = por %p252_p4, %p251_p3 }
  0x2f   :  { %188 = vmatmul.mubr.msk.bf16.vlgmr.msra.gmra.mrb[0].mxu0 %vm68_vm1, %v51_v3  ;;  %p254_p6 = pnand %p253_p5, %p247_p2 }
 0x102   :  { %v106_v4 = vpop.f32.mrb[0].mxu0 }
 0x103   :  { %v112_v5 = vrot.slane %v106_v4, 4  ;;  %v119_v6 = vmul.f32 %v106_v4, %v106_v4  ;;  %v189_v7 = vpop.f32.mrb[1].mxu0 }
 0x104   :  { %v109_v8 = vpop.f32.mrb[2].mxu0 }
 0x105   :  { %v113_v9 = vadd.f32 %v112_v5, %v106_v4  ;;  %v120_v10 = vrot.slane %v119_v6, 4  ;;  %v190_v11 = vpop.f32.mrb[3].mxu0 }
 0x107   :  { %v114_v12 = vrot.slane %v113_v9, 2  ;;  %v121_v13 = vadd.f32 %v120_v10, %v119_v6 }
 0x109   :  { %v115_v14 = vadd.f32 %v114_v12, %v113_v9  ;;  %v122_v15 = vrot.slane %v121_v13, 2 }
 0x10b   :  { %v116_v16 = vrot.slane %v115_v14, 1  ;;  %v123_v17 = vadd.f32 %v122_v15, %v121_v13 }
 0x10d   :  { %v117_v18 = vadd.f32 %v116_v16, %v115_v14  ;;  %v124_v19 = vrot.slane %v123_v17, 1 }
 0x10f   :  { %v118_v20 = vmul.f32 0.125, %v117_v18  ;;  %v125_v21 = vadd.f32 %v124_v19, %v123_v17 }
 0x111   :  { %v126_v22 = vmul.f32 0.125, %v125_v21  ;;  %v127_v23 = vmul.f32 %v118_v20, %v118_v20  ;;  %v134_v32 = vadd.f32 %v133_v28, %v118_v20 }
 0x113   :  { %v128_v24 = vsub.f32 %v126_v22, %v127_v23 }
 0x115   :  { %v130_v25 = vadd.f32 1e-05, %v128_v24 }
 0x117   :  { %200 = vrsqrt.f32 %v130_v25 }
 0x121   :  { %v201_v30 = vpop.eup %200 }
 0x122   :  { %v132_v31 = vmul.f32 %v201_v30, %v129_v27 }
 0x124   :  { %v136_v34 = vmul.f32 %v134_v32, %v132_v31  ;;  %v140_v35 = vmul.f32 1.25, %v132_v31  ;;  %v138_v38 = vmul.f32 %v133_v28, %v132_v31 }
 0x126   :  { %v137_v37 = vsub.f32 %v135_v33, %v136_v34  ;;  %v148_v39 = vrot.slane %v140_v35, %v147_v36 }
 0x128   :  { %v139_v40 = vadd.f32 %v138_v38, %v137_v37  ;;  %v150_v43 = vmul.f32 %v148_v39, %v106_v4 }
 0x12a   :  { %v141_v41 = vmul.f32 1.25, %v139_v40 }
 0x12c   :  { %v155_v44 = vrot.slane %v141_v41, %v147_v36 }
 0x12e   :  { %v157_v45 = vadd.f32 %v155_v44, %v150_v43 }
 0x130   :  { %v158_v46 = vsel %vm143_vm2, %v157_v45, 0.0 }
 0x131   :  { %v159_v47 = vmax.f32 %v158_v46, 0.0 }
 0x133   :  { %160 = vst [vmem:[#allocation7] sm:$0xff] %v159_v47 }
 0x134   :  { %257 = shalt.err (!%p254_p6)
}
 0x135   :  { %s258_s5 = scalar_lea.hbm %s377_s6, 128 }
 0x136   :  { %p259_p7 = scmp.ne.s32.totalorder %s377_s6, %s258_s5  ;;  %p262_p8 = scmp.lt.u32.totalorder %s258_s5, %s377_s6 }
 0x138   :  { %p264_p9 = pnand %p262_p8, %p259_p7 }
 0x13a   :  { %267 = shalt.err (!%p264_p9)
}
 0x13b   :  { %170 = dma.vmem_to_hbm [thread:$0]  %s168_s28, 128, %s377_s6, [#allocation4]  }
 0x13c   :  { %272 = dma.done.wait [#allocation4], 128  }
 0x13d   :  { %273 = vsyncadd [#allocation4], 4294967168 }
 0x13e   :  { %174 = vsyncpa [#allocation3], 1 }
 0x13f   :  { %175 = vsyncpa [#allocation6], 1 }
 0x140   :  { %176 = vsyncpa [#allocation4], 1 }

</bundles_post_ra>
